<compile_context>
chip_gen: v7x
topology: tpu7x:2x2x1
jax: 0.10.0
libtpu: 0.0.40
codegen_flags: <defaults>
</compile_context>

<pallas_src>
import functools

import jax
import jax.numpy as jnp
from jax import lax
from jax.experimental import pallas as pl
from jax.experimental.pallas import tpu as pltpu

# Module hyper-parameters (PyTorch defaults).
ALPHA = 1.0
C = 0.05
P = 1.0
ALPHA_COMPLEMENT = 1.0 - ALPHA
SELF_SGN = 1.0 if ALPHA_COMPLEMENT > 0 else -1.0   # -1.0 for the defaults

LANES = 128
MAX_TILE_ROWS = 4096                 # (4096, 128) f32 == 2 MiB per buffer
VMEM_LIMIT_BYTES = 32 * 1024 * 1024  # headroom for in/out double buffers + temps


def _round_up(n, m):
    return (n + m - 1) // m * m


def _fmix32(h):
    """murmur3 32-bit finalizer (avalanche mix), uint32 -> uint32."""
    h = h ^ (h >> jnp.uint32(16))
    h = h * jnp.uint32(0x85EBCA6B)
    h = h ^ (h >> jnp.uint32(13))
    h = h * jnp.uint32(0xC2B2AE35)
    h = h ^ (h >> jnp.uint32(16))
    return h


def _half_normal(seed_u32, shape):
    """|N(0,1)|-approximate noise, one sample per element, transcendental-free.

    Counter-based: hash(global flat index, seed) -> two 32-bit words -> four
    16-bit uniforms -> Irwin-Hall sum (~N(0,1) by CLT, range ~+-3.46 sigma),
    then abs().  Pure VPU work; the noise realization does not depend on the
    tile size or megacore split.
    TODO(synk): exact-Gaussian (Box-Muller / pltpu.stateful_normal) if the
    tails beyond ~3.5 sigma of torch.randn ever matter for this 0.05-scaled
    noise term.
    """
    row = lax.broadcasted_iota(jnp.int32, shape, 0).astype(jnp.uint32)
    col = lax.broadcasted_iota(jnp.int32, shape, 1).astype(jnp.uint32)
    base = pl.program_id(0).astype(jnp.uint32) * jnp.uint32(shape[0]) + row
    idx = base * jnp.uint32(LANES) + col                 # global element id

    k = idx ^ (seed_u32 * jnp.uint32(0x9E3779B9))
    w1 = _fmix32(k)
    w2 = _fmix32(k + jnp.uint32(0x85EBCA77))

    mask = jnp.uint32(0xFFFF)
    s = (w1 & mask) + (w1 >> jnp.uint32(16)) + (w2 & mask) + (w2 >> jnp.uint32(16))
    s = s.astype(jnp.int32).astype(jnp.float32)          # in [0, 262140]
    # sum of 4 x U{0..65535}: mean 131070, std ~ 65536/sqrt(3)
    z = (s - 131070.0) * (1.7320508075688772 / 65536.0)
    return jnp.abs(z)


def _noisy_hard_train_kernel(seed_ref, x_ref, o_ref):
    # Compute in f32 (matches the f32 PyTorch reference even for bf16 inputs).
    x = x_ref[...].astype(jnp.float32)
    h = jnp.clip(x, -1.0, 1.0)                           # Hardtanh

    native = h if ALPHA == 1.0 else ALPHA * h + ALPHA_COMPLEMENT * x

    # On-chip half-normal noise |randn| (no HBM noise stream, no pltpu PRNG).
    rnd = _half_normal(seed_ref[0].astype(jnp.uint32), x.shape)

    # c*d with d = -sgn(x)*self_sgn (sgn(0) == -1 here; harmless because the
    # tanh^2 factor is exactly 0 wherever |x| <= 1), and the 0.25 from
    # (sigmoid(z)-0.5)^2 == 0.25*tanh(z/2)^2 folded into the constant.
    coef = jnp.where(x > 0,
                     jnp.float32(-0.25 * C * SELF_SGN),
                     jnp.float32(0.25 * C * SELF_SGN))

    diff = h - x
    if P != 1.0:
        diff = P * diff
    t = jnp.tanh(0.5 * diff)                             # single EUP op / elem

    o_ref[...] = (native + coef * rnd * (t * t)).astype(o_ref.dtype)


def _noisy_hard_eval_kernel(x_ref, o_ref):
    x = x_ref[...]
    o_ref[...] = jnp.clip(x, -1.0, 1.0).astype(o_ref.dtype)


@functools.partial(jax.jit, static_argnames=("training",))
def noisy_hard_act(x, seed=0, *, training=True):
    """NoisyHardAct (Hardtanh hard function) forward. x: any shape / float dtype."""
    orig_shape = x.shape
    orig_dtype = x.dtype
    total = x.size
    itemsize = jnp.dtype(orig_dtype).itemsize

    # Lane-dense (rows, 128) slab.  Pad only the (<128-element) ragged tail;
    # the row axis is NOT rounded up to a tile multiple -- Pallas masks the
    # partial last block, so no extra full-array pad/slice HBM pass.
    rows = pl.cdiv(total, LANES)
    padded_total = rows * LANES
    flat = x.reshape(-1)
    if padded_total != total:
        flat = jnp.pad(flat, (0, padded_total - total))
    x2 = flat.reshape(rows, LANES)

    # Tile choice: >=4 grid steps (keeps both v7x TensorCores and the DMA
    # pipeline busy) but capped at 4096 rows (2 MiB f32 per buffer -> fits
    # v5e's 16 MiB scoped VMEM and v7x's 64 MiB per-TC VMEM comfortably).
    if rows <= 8:
        tile_rows = rows                       # block == whole array (tiny input)
    else:
        tile_rows = min(MAX_TILE_ROWS, max(8, _round_up(pl.cdiv(rows, 4), 8)))
    grid = (pl.cdiv(rows, tile_rows),)

    block = (tile_rows, LANES)
    out_sds = jax.ShapeDtypeStruct((rows, LANES), orig_dtype)
    cparams = pltpu.CompilerParams(
        dimension_semantics=("parallel",),
        vmem_limit_bytes=VMEM_LIMIT_BYTES,
    )

    if training:
        seed_arr = jnp.asarray(seed, dtype=jnp.int32).reshape((1,))
        out2 = pl.pallas_call(
            _noisy_hard_train_kernel,
            out_shape=out_sds,
            grid_spec=pltpu.PrefetchScalarGridSpec(
                num_scalar_prefetch=1,
                grid=grid,
                in_specs=[pl.BlockSpec(block, lambda i, seed_ref: (i, 0))],
                out_specs=pl.BlockSpec(block, lambda i, seed_ref: (i, 0)),
            ),
            compiler_params=cparams,
            cost_estimate=pl.CostEstimate(
                flops=40 * padded_total,
                transcendentals=1 * padded_total,
                bytes_accessed=2 * padded_total * itemsize),
        )(seed_arr, x2)
    else:
        # Eval path streams only x (no noise / no seed at all).
        out2 = pl.pallas_call(
            _noisy_hard_eval_kernel,
            out_shape=out_sds,
            grid_spec=pltpu.PrefetchScalarGridSpec(
                num_scalar_prefetch=0,
                grid=grid,
                in_specs=[pl.BlockSpec(block, lambda i: (i, 0))],
                out_specs=pl.BlockSpec(block, lambda i: (i, 0)),
            ),
            compiler_params=cparams,
            cost_estimate=pl.CostEstimate(
                flops=2 * padded_total,
                transcendentals=0,
                bytes_accessed=2 * padded_total * itemsize),
        )(x2)

    out_flat = out2.reshape(-1)
    if padded_total != total:
        out_flat = out_flat[:total]
    return out_flat.reshape(orig_shape)


if __name__ == "__main__":
    key = jax.random.PRNGKey(0)

    # NCHW input: batch=2, channels=4, spatial=16x16.
    x = jax.random.normal(key, (2, 4, 16, 16), dtype=jnp.float32) * 2.0

    out_eval = noisy_hard_act(x, training=False)
    out_train = noisy_hard_act(x, seed=1234, training=True)
    jax.block_until_ready(out_eval)
    jax.block_until_ready(out_train)

    # Eval mode is exactly hardtanh.
    h = jnp.clip(x, -1.0, 1.0)
    assert jnp.allclose(out_eval, h, atol=1e-6, rtol=1e-6)

    # Training mode: noise is generated on-chip, so verify the deterministic
    # structure of the output instead of bit-exact values.
    delta = out_train - h
    inside = jnp.abs(x) <= 1.0
    #  * the stochastic term vanishes where hardtanh is the identity (diff == 0)
    assert bool(jnp.all(jnp.where(inside, jnp.abs(delta) <= 1e-6, True)))
    #  * elsewhere the perturbation has the sign of x (d == sgn(x) for defaults)
    assert bool(jnp.all(jnp.where(x > 1.0, delta >= -1e-6, True)))
    assert bool(jnp.all(jnp.where(x < -1.0, delta <= 1e-6, True)))
    #  * and its magnitude is bounded by 0.25*c*|noise| (noise bounded ~3.5 sigma)
    assert bool(jnp.all(jnp.abs(delta) <= 0.25 * C * 8.0))
    assert bool(jnp.all(jnp.isfinite(out_train)))

    print("KERNEL_OK")
</pallas_src>

<mosaic_0001>
module attributes {stable_mosaic.version = 11 : i64} {
  func.func @_noisy_hard_eval_kernel(%arg0: i32, %arg1: memref<8x128xf32, #tpu.memory_space<vmem>>, %arg2: memref<8x128xf32, #tpu.memory_space<vmem>>) attributes {dimension_semantics = [#tpu.dimension_semantics<parallel>], iteration_bounds = array<i64: 2>, scalar_prefetch = 0 : i64, scratch_operands = 0 : i64, tpu.core_type = #tpu.core_type<tc>, window_params = [{transform_indices = @transform_0, window_bounds = array<i64: 8, 128>}, {transform_indices = @transform_1, window_bounds = array<i64: 8, 128>}]} {
    %c0 = arith.constant 0 : index
    %c0_0 = arith.constant 0 : index
    %0 = vector.load %arg1[%c0, %c0_0] : memref<8x128xf32, #tpu.memory_space<vmem>>, vector<8x128xf32>
    %cst = arith.constant -1.000000e+00 : f32
    %cst_1 = arith.constant 1.000000e+00 : f32
    %1 = vector.broadcast %cst : f32 to vector<8x128xf32>
    %2 = arith.maximumf %1, %0 : vector<8x128xf32>
    %3 = vector.broadcast %cst_1 : f32 to vector<8x128xf32>
    %4 = arith.minimumf %3, %2 : vector<8x128xf32>
    %c0_2 = arith.constant 0 : index
    %c0_3 = arith.constant 0 : index
    %5 = vector.load %arg2[%c0_2, %c0_3] : memref<8x128xf32, #tpu.memory_space<vmem>>, vector<8x128xf32>
    tpu.vector_store %arg2[%c0_2, %c0_3], %4 {strides = array<i32>} : memref<8x128xf32, #tpu.memory_space<vmem>>, vector<8x128xf32>,
    return
  }
  func.func @transform_0(%arg0: i32) -> (i32, i32) {
    %c0_i32 = arith.constant 0 : i32
    %c0_i32_0 = arith.constant 0 : i32
    return %arg0, %c0_i32 : i32, i32
  }
  func.func @transform_1(%arg0: i32) -> (i32, i32) {
    %c0_i32 = arith.constant 0 : i32
    %c0_i32_0 = arith.constant 0 : i32
    return %arg0, %c0_i32 : i32, i32
  }
}

</mosaic_0001>

<bundles_post_ra>
// kernel: noisy_hard_act.1
= control target key start
LH: loop header
LB: loop body
LE: loop exit
PB: predicated region body
PF: predicated region fallthrough
CT: control target
= control target key end

     0   :  { %s191_s6 = smov 0   ;;  %s211_s0 = inlined_call_operand.vmem [shape: f32[16,128], index: 0, kind: input, shape index: {}]   ;;  %s212_s1 = inlined_call_operand.vmem [shape: f32[16,128], index: 1, kind: output, shape index: {}]  }
   0x1 LB: > { %s169_s7 = sadd.s32 4294967295, %s193_s6   ;;  %p173_p0 = scmp.ge.s32.totalorder %s193_s6, 1  ;;  %s193_s6 = sphi %s191_s6, %s11_s6  }
   0x2   : > { %p86_p1 = scmp.lt.s32.totalorder %s193_s6, 3 }
   0x4   : > { %p87_p2 = pnand %p173_p0, %p86_p1 }
   0x5   : > { %p104_p3 = scmp.lt.s32.totalorder (!%p87_p2), %s169_s7, 1 }
   0x6   : > { %90 = sbr.rel (%p87_p2) target bundleno = 20 (0x14), region = 24 }
   0xd   : > { %s214_s7 = smov (!%p104_p3, %s169_s7), 1 }
   0xe   : > { %s174_s8 = sshll.u32 %s214_s7, 3 }
   0xf   : > { %s107_s11 = scalar_lea.vmem %s211_s0, %s174_s8  ;;  %s111_s14 = scalar_lea.vmem %s212_s1, %s174_s8 }
  0x10   : > { %v112_v0 = vld [vmem:[%s107_s11] sm:$0xff] }
  0x11   : > { %v176_v1 = vclamps-f32 %v112_v0, 1.0 }
  0x13   : > { %115 = vst [vmem:[%s111_s14] sm:$0xff] %v176_v1 }
  0x14 PF: > { %s11_s6 = sadd.s32 1, %s193_s6  }
  0x15   : > { %p8_p4 = scmp.ge.s32.totalorder %s11_s6, 4  }
  0x17   :  { %10 = sbr.rel (!%p8_p4) target bundleno = 1 (0x1), region = 54 }

</bundles_post_ra>
